<compile_context>
chip_gen: v5e
topology: v5e:2x2
jax: 0.10.0
libtpu: 0.0.40
codegen_flags: <defaults>
</compile_context>

<pallas_src>
import math

import jax
import jax.numpy as jnp
from jax.experimental import pallas as pl
from jax.experimental.pallas import tpu as pltpu

EPS = 1e-5  # PyTorch nn.LayerNorm default eps


def _patch_merging_kernel(x_ref, wev_ref, wod_ref, bias_ref, o_ref):
    """x_ref: (TH, 2, W/2, 2C); dim 1 is H-row parity.  The parity-0 slab holds
    [x0 | x2] along its last axis, parity-1 holds [x1 | x3].
    wev/wod: (2C, 2C) gamma-folded, row-reordered halves of W^T (bf16).
    bias_ref: (1, 2C) f32 = beta @ W^T.   o_ref: (TH * W/2, 2C)."""
    th, _, wh, c2 = x_ref.shape
    tr = th * wh
    inv_n = 1.0 / (2 * c2)  # 1 / (4*C)

    xb = x_ref[...]
    ev = xb[:, 0, :, :].reshape(tr, c2).astype(jnp.float32)
    od = xb[:, 1, :, :].reshape(tr, c2).astype(jnp.float32)

    # One-pass LayerNorm statistics over the (virtual) 4C feature axis.
    s1 = jnp.sum(ev, axis=-1, keepdims=True) + jnp.sum(od, axis=-1, keepdims=True)
    s2 = jnp.sum(ev * ev, axis=-1, keepdims=True) + jnp.sum(od * od, axis=-1, keepdims=True)
    mean = s1 * inv_n
    var = s2 * inv_n - mean * mean
    inv = jax.lax.rsqrt(var + EPS)

    # gamma is pre-folded into wev/wod, beta into bias_ref -> only normalize here.
    ev_hat = ((ev - mean) * inv).astype(wev_ref.dtype)
    od_hat = ((od - mean) * inv).astype(wod_ref.dtype)

    # Bias-free Linear 4C -> 2C split as two MXU matmuls with f32 accumulation.
    y = jnp.dot(ev_hat, wev_ref[...], preferred_element_type=jnp.float32)
    y = y + jnp.dot(od_hat, wod_ref[...], preferred_element_type=jnp.float32)
    y = y + bias_ref[...]
    o_ref[...] = y.astype(o_ref.dtype)


def patch_merging_forward(x, input_resolution, weight, gamma, beta, *,
                          matmul_dtype=jnp.bfloat16,
                          target_rows=1024,
                          vmem_budget_bytes=20 * 1024 * 1024,
                          vmem_limit_bytes=32 * 1024 * 1024):
    """Pallas implementation of PatchMerging.forward.

    Args:
      x: (B, H*W, C)
      input_resolution: (H, W)
      weight: (2*C, 4*C)   -- nn.Linear(4C, 2C, bias=False) weight
      gamma, beta: (4*C,)  -- LayerNorm(4C) affine params
    Returns:
      (B, H*W//4, 2*C), same dtype as x.
    """
    h, w = input_resolution
    b, l, c = x.shape
    assert l == h * w, "input feature has wrong size"
    assert h % 2 == 0 and w % 2 == 0, f"x size ({h}*{w}) are not even."

    wh = w // 2                 # output columns per merged row
    r2 = b * (h // 2)           # number of (batch, merged-row) groups
    c2 = 2 * c                  # width of one parity chunk ([x0|x2] or [x1|x3])
    c4 = 4 * c
    co = 2 * c                  # output channels

    # Free reshape (pure view of contiguous data): (B, H*W, C) -> (R2, 2, W/2, 2C).
    x_r = x.reshape(r2, 2, wh, c2)

    # ---- tiny host-side param prep: fold LayerNorm affine into the matmul ----
    w_t = jnp.transpose(weight).astype(jnp.float32)        # (4C, 2C): y = feat @ w_t
    g = gamma.astype(jnp.float32)
    bt = beta.astype(jnp.float32)
    # even-row chunk features = [x0 | x2] -> rows [0:C] and [2C:3C] of w_t / gamma
    w_ev = jnp.concatenate([w_t[0:c], w_t[2 * c:3 * c]], axis=0)
    w_od = jnp.concatenate([w_t[c:2 * c], w_t[3 * c:4 * c]], axis=0)
    g_ev = jnp.concatenate([g[0:c], g[2 * c:3 * c]])[:, None]
    g_od = jnp.concatenate([g[c:2 * c], g[3 * c:4 * c]])[:, None]
    w_ev = (g_ev * w_ev).astype(matmul_dtype)               # (2C, 2C) for the MXU
    w_od = (g_od * w_od).astype(matmul_dtype)
    bias_row = (bt @ w_t).reshape(1, co).astype(jnp.float32)

    # ---- row-tile selection (rows = merged output tokens) ----
    xb = jnp.dtype(x.dtype).itemsize
    wb = jnp.dtype(matmul_dtype).itemsize
    # per-output-row VMEM: double-buffered in/out blocks + in-kernel f32/bf16 temps
    row_bytes = 2 * c4 * xb + 2 * co * xb + 3 * c4 * 4 + c4 * wb + co * 4
    w_bytes = 2 * (c2 * co * wb) * 2 + co * 4 * 2
    avail = max(vmem_budget_bytes - w_bytes, row_bytes * wh)
    tr_max = max(wh, avail // row_bytes)
    tr = int(min(target_rows, tr_max))
    th = max(1, min(tr // wh, r2))
    if th < r2:
        # output block has th*wh sublanes; keep it a multiple of 8 (else full dim)
        m = 8 // math.gcd(wh, 8)
        th = max(m, (th // m) * m)
        th = min(th, r2)
    grid = (pl.cdiv(r2, th),)   # ragged last block handled by Pallas masking

    out = pl.pallas_call(
        _patch_merging_kernel,
        out_shape=jax.ShapeDtypeStruct((r2 * wh, co), x.dtype),
        grid_spec=pltpu.PrefetchScalarGridSpec(
            num_scalar_prefetch=0,
            grid=grid,
            in_specs=[
                # one contiguous block holding both H-row parities
                pl.BlockSpec((th, 2, wh, c2), lambda g_: (g_, 0, 0, 0)),
                pl.BlockSpec((c2, co), lambda g_: (0, 0)),
                pl.BlockSpec((c2, co), lambda g_: (0, 0)),
                pl.BlockSpec((1, co), lambda g_: (0, 0)),
            ],
            out_specs=pl.BlockSpec((th * wh, co), lambda g_: (g_, 0)),
        ),
        compiler_params=pltpu.CompilerParams(
            dimension_semantics=("parallel",),
            vmem_limit_bytes=vmem_limit_bytes,
        ),
    )(x_r, w_ev, w_od, bias_row)

    # TODO(synk): optionally pad the output lane dim (2C) to a multiple of 128 when
    # C is not a multiple of 64; skipped to avoid the extra HBM copy on the slice.
    return out.reshape(b, (h // 2) * (w // 2), co)


def patch_merging_reference(x, input_resolution, weight, gamma, beta):
    """Pure-JAX (f32) reference for correctness checking."""
    h, w = input_resolution
    b, l, c = x.shape
    xv = x.reshape(b, h, w, c)
    x0 = xv[:, 0::2, 0::2, :]
    x1 = xv[:, 1::2, 0::2, :]
    x2 = xv[:, 0::2, 1::2, :]
    x3 = xv[:, 1::2, 1::2, :]
    xm = jnp.concatenate([x0, x1, x2, x3], axis=-1).reshape(b, -1, 4 * c)
    mean = jnp.mean(xm, axis=-1, keepdims=True)
    var = jnp.mean((xm - mean) ** 2, axis=-1, keepdims=True)
    xn = (xm - mean) / jnp.sqrt(var + EPS) * gamma + beta
    return jnp.einsum("blk,ok->blo", xn, weight)


if __name__ == "__main__":
    # Small shapes consistent with the module: B=2, dim C=4, H=W=16 -> L=256
    B, C, H, W = 2, 4, 16, 16
    key = jax.random.PRNGKey(0)
    kx, kw, kg, kb = jax.random.split(key, 4)

    x = jax.random.normal(kx, (B, H * W, C), dtype=jnp.float32)
    # nn.Linear(4*dim, 2*dim, bias=False): weight shape (2*dim, 4*dim)
    weight = jax.random.normal(kw, (2 * C, 4 * C), dtype=jnp.float32) * 0.05
    # nn.LayerNorm(4*dim): gamma, beta shape (4*dim,)
    gamma = 1.0 + 0.1 * jax.random.normal(kg, (4 * C,), dtype=jnp.float32)
    beta = 0.1 * jax.random.normal(kb, (4 * C,), dtype=jnp.float32)

    out = patch_merging_forward(x, (H, W), weight, gamma, beta)
    out = jax.block_until_ready(out)

    ref = patch_merging_reference(x, (H, W), weight, gamma, beta)
    assert out.shape == (B, (H // 2) * (W // 2), 2 * C), out.shape
    # bf16 matmul path with f32 accumulate -> slightly looser tolerance than pure f32
    assert jnp.allclose(out, ref, atol=2e-2, rtol=2e-2), "mismatch vs reference"

    print("KERNEL_OK")
</pallas_src>

<mosaic_0001>
module attributes {stable_mosaic.version = 11 : i64} {
  func.func @_patch_merging_kernel(%arg0: i32, %arg1: memref<16x2x8x8xf32, #tpu.memory_space<vmem>>, %arg2: memref<8x8xbf16, #tpu.memory_space<vmem>>, %arg3: memref<8x8xbf16, #tpu.memory_space<vmem>>, %arg4: memref<1x8xf32, #tpu.memory_space<vmem>>, %arg5: memref<128x8xf32, #tpu.memory_space<vmem>>) attributes {dimension_semantics = [#tpu.dimension_semantics<parallel>], iteration_bounds = array<i64: 1>, scalar_prefetch = 0 : i64, scratch_operands = 0 : i64, tpu.core_type = #tpu.core_type<tc>, window_params = [{transform_indices = @transform_0, window_bounds = array<i64: 16, 2, 8, 8>}, {pipeline_mode = #tpu.pipeline_mode<synchronous>, transform_indices = @transform_1, window_bounds = array<i64: 8, 8>}, {pipeline_mode = #tpu.pipeline_mode<synchronous>, transform_indices = @transform_2, window_bounds = array<i64: 8, 8>}, {pipeline_mode = #tpu.pipeline_mode<synchronous>, transform_indices = @transform_3, window_bounds = array<i64: 1, 8>}, {transform_indices = @transform_4, window_bounds = array<i64: 128, 8>}]} {
    %c0 = arith.constant 0 : index
    %c0_0 = arith.constant 0 : index
    %c0_1 = arith.constant 0 : index
    %c0_2 = arith.constant 0 : index
    %0 = vector.load %arg1[%c0, %c0_0, %c0_1, %c0_2] : memref<16x2x8x8xf32, #tpu.memory_space<vmem>>, vector<16x2x8x8xf32>
    %1 = vector.extract_strided_slice %0 {offsets = [0, 0, 0, 0], sizes = [16, 1, 8, 8], strides = [1, 1, 1, 1]} : vector<16x2x8x8xf32> to vector<16x1x8x8xf32>
    %2 = vector.shape_cast %1 : vector<16x1x8x8xf32> to vector<16x8x8xf32>
    %3 = vector.shape_cast %2 : vector<16x8x8xf32> to vector<128x8xf32>
    %4 = vector.extract_strided_slice %0 {offsets = [0, 1, 0, 0], sizes = [16, 1, 8, 8], strides = [1, 1, 1, 1]} : vector<16x2x8x8xf32> to vector<16x1x8x8xf32>
    %5 = vector.shape_cast %4 : vector<16x1x8x8xf32> to vector<16x8x8xf32>
    %6 = vector.shape_cast %5 : vector<16x8x8xf32> to vector<128x8xf32>
    %cst = arith.constant dense<0.000000e+00> : vector<128xf32>
    %7 = vector.multi_reduction <add>, %3, %cst [1] : vector<128x8xf32> to vector<128xf32>
    %8 = vector.shape_cast %7 : vector<128xf32> to vector<128x1xf32>
    %cst_3 = arith.constant dense<0.000000e+00> : vector<128xf32>
    %9 = vector.multi_reduction <add>, %6, %cst_3 [1] : vector<128x8xf32> to vector<128xf32>
    %10 = vector.shape_cast %9 : vector<128xf32> to vector<128x1xf32>
    %11 = arith.addf %8, %10 : vector<128x1xf32>
    %12 = arith.mulf %3, %3 : vector<128x8xf32>
    %cst_4 = arith.constant dense<0.000000e+00> : vector<128xf32>
    %13 = vector.multi_reduction <add>, %12, %cst_4 [1] : vector<128x8xf32> to vector<128xf32>
    %14 = vector.shape_cast %13 : vector<128xf32> to vector<128x1xf32>
    %15 = arith.mulf %6, %6 : vector<128x8xf32>
    %cst_5 = arith.constant dense<0.000000e+00> : vector<128xf32>
    %16 = vector.multi_reduction <add>, %15, %cst_5 [1] : vector<128x8xf32> to vector<128xf32>
    %17 = vector.shape_cast %16 : vector<128xf32> to vector<128x1xf32>
    %18 = arith.addf %14, %17 : vector<128x1xf32>
    %cst_6 = arith.constant 6.250000e-02 : f32
    %19 = vector.broadcast %cst_6 : f32 to vector<128x1xf32>
    %20 = arith.mulf %11, %19 : vector<128x1xf32>
    %cst_7 = arith.constant 6.250000e-02 : f32
    %21 = vector.broadcast %cst_7 : f32 to vector<128x1xf32>
    %22 = arith.mulf %18, %21 : vector<128x1xf32>
    %23 = arith.mulf %20, %20 : vector<128x1xf32>
    %24 = arith.subf %22, %23 : vector<128x1xf32>
    %cst_8 = arith.constant 9.99999974E-6 : f32
    %25 = vector.broadcast %cst_8 : f32 to vector<128x1xf32>
    %26 = arith.addf %24, %25 : vector<128x1xf32>
    %27 = math.rsqrt %26 : vector<128x1xf32>
    %28 = vector.broadcast %20 : vector<128x1xf32> to vector<128x8xf32>
    %29 = arith.subf %3, %28 : vector<128x8xf32>
    %30 = vector.broadcast %27 : vector<128x1xf32> to vector<128x8xf32>
    %31 = arith.mulf %29, %30 : vector<128x8xf32>
    %32 = arith.truncf %31 : vector<128x8xf32> to vector<128x8xbf16>
    %33 = vector.broadcast %20 : vector<128x1xf32> to vector<128x8xf32>
    %34 = arith.subf %6, %33 : vector<128x8xf32>
    %35 = vector.broadcast %27 : vector<128x1xf32> to vector<128x8xf32>
    %36 = arith.mulf %34, %35 : vector<128x8xf32>
    %37 = arith.truncf %36 : vector<128x8xf32> to vector<128x8xbf16>
    %c0_9 = arith.constant 0 : index
    %c0_10 = arith.constant 0 : index
    %38 = vector.load %arg2[%c0_9, %c0_10] : memref<8x8xbf16, #tpu.memory_space<vmem>>, vector<8x8xbf16>
    %cst_11 = arith.constant dense<0.000000e+00> : vector<128x8xf32>
    %39 = tpu.matmul %32, %38, %cst_11 {dimension_numbers = #tpu.dot_dimension_numbers<[1], [0], [0], [1], [0, 0, 1, 1], [], []>} : vector<128x8xbf16>, vector<8x8xbf16>, vector<128x8xf32> -> vector<128x8xf32>
    %c0_12 = arith.constant 0 : index
    %c0_13 = arith.constant 0 : index
    %40 = vector.load %arg3[%c0_12, %c0_13] : memref<8x8xbf16, #tpu.memory_space<vmem>>, vector<8x8xbf16>
    %cst_14 = arith.constant dense<0.000000e+00> : vector<128x8xf32>
    %41 = tpu.matmul %37, %40, %cst_14 {dimension_numbers = #tpu.dot_dimension_numbers<[1], [0], [0], [1], [0, 0, 1, 1], [], []>} : vector<128x8xbf16>, vector<8x8xbf16>, vector<128x8xf32> -> vector<128x8xf32>
    %42 = arith.addf %39, %41 : vector<128x8xf32>
    %c0_15 = arith.constant 0 : index
    %c0_16 = arith.constant 0 : index
    %43 = vector.load %arg4[%c0_15, %c0_16] : memref<1x8xf32, #tpu.memory_space<vmem>>, vector<1x8xf32>
    %44 = vector.broadcast %43 : vector<1x8xf32> to vector<128x8xf32>
    %45 = arith.addf %42, %44 : vector<128x8xf32>
    %c0_17 = arith.constant 0 : index
    %c0_18 = arith.constant 0 : index
    %46 = vector.load %arg5[%c0_17, %c0_18] : memref<128x8xf32, #tpu.memory_space<vmem>>, vector<128x8xf32>
    tpu.vector_store %arg5[%c0_17, %c0_18], %45 {strides = array<i32>} : memref<128x8xf32, #tpu.memory_space<vmem>>, vector<128x8xf32>,
    return
  }
  func.func @transform_0(%arg0: i32) -> (i32, i32, i32, i32) {
    %c0_i32 = arith.constant 0 : i32
    %c0_i32_0 = arith.constant 0 : i32
    %c0_i32_1 = arith.constant 0 : i32
    %c0_i32_2 = arith.constant 0 : i32
    return %arg0, %c0_i32, %c0_i32_0, %c0_i32_1 : i32, i32, i32, i32
  }
  func.func @transform_1(%arg0: i32) -> (i32, i32) {
    %c0_i32 = arith.constant 0 : i32
    %c0_i32_0 = arith.constant 0 : i32
    %c0_i32_1 = arith.constant 0 : i32
    return %c0_i32, %c0_i32_0 : i32, i32
  }
  func.func @transform_2(%arg0: i32) -> (i32, i32) {
    %c0_i32 = arith.constant 0 : i32
    %c0_i32_0 = arith.constant 0 : i32
    %c0_i32_1 = arith.constant 0 : i32
    return %c0_i32, %c0_i32_0 : i32, i32
  }
  func.func @transform_3(%arg0: i32) -> (i32, i32) {
    %c0_i32 = arith.constant 0 : i32
    %c0_i32_0 = arith.constant 0 : i32
    %c0_i32_1 = arith.constant 0 : i32
    return %c0_i32, %c0_i32_0 : i32, i32
  }
  func.func @transform_4(%arg0: i32) -> (i32, i32) {
    %c0_i32 = arith.constant 0 : i32
    %c0_i32_0 = arith.constant 0 : i32
    return %arg0, %c0_i32 : i32, i32
  }
}

</mosaic_0001>

<bundles_post_ra>
// kernel: tpu_custom_call.1
= control target key start
LH: loop header
LB: loop body
LE: loop exit
PB: predicated region body
PF: predicated region fallthrough
CT: control target
= control target key end

     0   :  { %vm50_vm0 = vcmask 64512   ;;  %vm653_vm1 = vcmask 1043456   ;;  %s1456_s0 = inlined_call_operand.vmem [shape: f32[16,2,8,8], index: 0, kind: input, shape index: {}]   ;;  %s1457_s2 = inlined_call_operand.vmem [shape: bf16[8,8], index: 2, kind: input, shape index: {}]   ;;  %s1458_s1 = inlined_call_operand.vmem [shape: bf16[8,8], index: 1, kind: input, shape index: {}]   ;;  %s1459_s3 = inlined_call_operand.vmem [shape: f32[1,8], index: 3, kind: input, shape index: {}]   ;;  %s1460_s4 = inlined_call_operand.vmem [shape: f32[128,8], index: 4, kind: output, shape index: {}]  }
   0x1   :  { %v901_v0 = vld [vmem:[%s1456_s0 + $0x88] sm:$0xff]  ;;  %v906_v1 = vld [vmem:[%s1456_s0 + $0x80] sm:$0xff]  ;;  %v917_v5 = vld [vmem:[%s1456_s0 + $0x90] sm:$0xff] }
   0x2   :  { %v123_v2 = vsel %vm50_vm0, %v901_v0, 0.0  ;;  %v75_v3 = vsel %vm50_vm0, %v906_v1, 0.0  ;;  %v171_v4 = vmul.f32 %v906_v1, %v906_v1  ;;  %v923_v7 = vld [vmem:[%s1456_s0 + $0x98] sm:$0xff]  ;;  %v172_v8 = vmul.f32 %v917_v5, %v917_v5  ;;  %v939_v14 = vld [vmem:[%s1456_s0] sm:$0xff]  ;;  %v948_v18 = vld [vmem:[%s1456_s0 + $0x10] sm:$0xff] }
   0x3   :  { %124 = vadd.xlane.f32.xlu1 %v123_v2  ;;  %76 = vadd.xlane.f32.xlu0 %v75_v3  ;;  %v126_v9 = vsel %vm50_vm0, %v923_v7, 0.0  ;;  %v78_v10 = vsel %vm50_vm0, %v917_v5, 0.0  ;;  %v236_v12 = vmul.f32 %v923_v7, %v923_v7  ;;  %v235_v13 = vmul.f32 %v901_v0, %v901_v0  ;;  %v953_v19 = vld [vmem:[%s1456_s0 + $0x8] sm:$0xff]  ;;  %v958_v20 = vld [vmem:[%s1456_s0 + $0x18] sm:$0xff]  ;;  %v980_v31 = vld [vmem:[%s1456_s0 + $0xa0] sm:$0xff] }
   0x4   :  { %v203_v6 = vsel %vm50_vm0, %v171_v4, 0.0  ;;  %v206_v11 = vsel %vm50_vm0, %v172_v8, 0.0  ;;  %v51_v17 = vsel %vm50_vm0, %v939_v14, 0.0  ;;  %v54_v21 = vsel %vm50_vm0, %v948_v18, 0.0  ;;  %v985_v32 = vld [vmem:[%s1456_s0 + $0xb0] sm:$0xff]  ;;  %v995_v36 = vld [vmem:[%s1456_s0 + $0xb8] sm:$0xff] }
   0x5   :  { %204 = vadd.xlane.f32.xlu2 %v203_v6  ;;  %v270_v15 = vsel %vm50_vm0, %v236_v12, 0.0  ;;  %v267_v16 = vsel %vm50_vm0, %v235_v13, 0.0  ;;  %v99_v22 = vsel %vm50_vm0, %v953_v19, 0.0  ;;  %v102_v23 = vsel %vm50_vm0, %v958_v20, 0.0  ;;  %v1000_v37 = vld [vmem:[%s1456_s0 + $0xa8] sm:$0xff]  ;;  %v1021_v48 = vld [vmem:[%s1456_s0 + $0x30] sm:$0xff] }
   0x6   :  { %v164_v24 = vmul.f32 %v948_v18, %v948_v18  ;;  %v163_v25 = vmul.f32 %v939_v14, %v939_v14  ;;  %v227_v26 = vmul.f32 %v953_v19, %v953_v19  ;;  %v228_v30 = vmul.f32 %v958_v20, %v958_v20  ;;  %v1026_v49 = vld [vmem:[%s1456_s0 + $0x20] sm:$0xff]  ;;  %v1031_v50 = vld [vmem:[%s1456_s0 + $0x28] sm:$0xff]  ;;  %v1044_v55 = vld [vmem:[%s1456_s0 + $0x38] sm:$0xff] }
   0x7   :  { %v81_v33 = vsel %vm50_vm0, %v980_v31, 0.0  ;;  %v84_v35 = vsel %vm50_vm0, %v985_v32, 0.0  ;;  %v173_v38 = vmul.f32 %v980_v31, %v980_v31  ;;  %v132_v39 = vsel %vm50_vm0, %v995_v36, 0.0  ;;  %v1059_v62 = vld [vmem:[%s1456_s0 + $0xc0] sm:$0xff]  ;;  %v1068_v4 = vld [vmem:[%s1456_s0 + $0xc8] sm:$0xff]  ;;  %v1073_v6 = vld [vmem:[%s1456_s0 + $0xd0] sm:$0xff] }
   0x8   :  { %v182_v27 = vsel %vm50_vm0, %v164_v24, 0.0  ;;  %v179_v28 = vsel %vm50_vm0, %v163_v25, 0.0  ;;  %v243_v29 = vsel %vm50_vm0, %v227_v26, 0.0  ;;  %v246_v34 = vsel %vm50_vm0, %v228_v30, 0.0  ;;  %v1078_v8 = vld [vmem:[%s1456_s0 + $0xd8] sm:$0xff]  ;;  %v1105_v24 = vld [vmem:[%s1456_s0 + $0x50] sm:$0xff] }
   0x9   :  { %v129_v40 = vsel %vm50_vm0, %v1000_v37, 0.0  ;;  %v209_v41 = vsel %vm50_vm0, %v173_v38, 0.0  ;;  %v237_v42 = vmul.f32 %v1000_v37, %v1000_v37  ;;  %v174_v43 = vmul.f32 %v985_v32, %v985_v32 }
   0xa   :  { %v238_v44 = vmul.f32 %v995_v36, %v995_v36  ;;  %v60_v51 = vsel %vm50_vm0, %v1021_v48, 0.0  ;;  %v57_v52 = vsel %vm50_vm0, %v1026_v49, 0.0  ;;  %v105_v53 = vsel %vm50_vm0, %v1031_v50, 0.0 }
   0xb   :  { %127 = vadd.xlane.f32.xlu1 %v126_v9  ;;  %79 = vadd.xlane.f32.xlu0 %v78_v10  ;;  %v273_v45 = vsel %vm50_vm0, %v237_v42, 0.0  ;;  %v212_v46 = vsel %vm50_vm0, %v174_v43, 0.0  ;;  %v165_v54 = vmul.f32 %v1026_v49, %v1026_v49  ;;  %v166_v56 = vmul.f32 %v1021_v48, %v1021_v48 }
   0xc   :  { %v276_v47 = vsel %vm50_vm0, %v238_v44, 0.0  ;;  %v108_v58 = vsel %vm50_vm0, %v1044_v55, 0.0  ;;  %v230_v60 = vmul.f32 %v1044_v55, %v1044_v55  ;;  %v229_v61 = vmul.f32 %v1031_v50, %v1031_v50 }
   0xd   :  { %207 = vadd.xlane.f32.xlu2 %v206_v11  ;;  %v185_v57 = vsel %vm50_vm0, %v165_v54, 0.0  ;;  %v188_v59 = vsel %vm50_vm0, %v166_v56, 0.0  ;;  %v87_v3 = vsel %vm50_vm0, %v1059_v62, 0.0  ;;  %v135_v9 = vsel %vm50_vm0, %v1068_v4, 0.0  ;;  %v1151_v54 = vld [vmem:[%s1456_s0 + $0xe8] sm:$0xff] }
   0xe   :  { %v252_v63 = vsel %vm50_vm0, %v230_v60, 0.0  ;;  %v249_v2 = vsel %vm50_vm0, %v229_v61, 0.0  ;;  %v90_v10 = vsel %vm50_vm0, %v1073_v6, 0.0  ;;  %v138_v11 = vsel %vm50_vm0, %v1078_v8, 0.0  ;;  %v628_v61 = vld [vmem:[%s1457_s2] sm:$0xf] }
   0xf   :  { %v176_v12 = vmul.f32 %v1073_v6, %v1073_v6  ;;  %v175_v13 = vmul.f32 %v1059_v62, %v1059_v62 }
  0x13   :  { %271 = vadd.xlane.f32.xlu1 %v270_v15  ;;  %268 = vadd.xlane.f32.xlu0 %v267_v16  ;;  %v239_v15 = vmul.f32 %v1068_v4, %v1068_v4  ;;  %v218_v16 = vsel %vm50_vm0, %v176_v12, 0.0 }
  0x15   :  { %52 = vadd.xlane.f32.xlu2 %v51_v17  ;;  %v215_v17 = vsel %vm50_vm0, %v175_v13, 0.0  ;;  %v1174_v13 = vld [vmem:[%s1456_s0 + $0xf8] sm:$0xff] }
  0x1b   :  { %55 = vadd.xlane.f32.xlu0 %v54_v21  ;;  %100 = vadd.xlane.f32.xlu1 %v99_v22  ;;  %v279_v21 = vsel %vm50_vm0, %v239_v15, 0.0  ;;  %v240_v22 = vmul.f32 %v1078_v8, %v1078_v8 }
  0x1d   :  { %103 = vadd.xlane.f32.xlu2 %v102_v23  ;;  %v1100_v23 = vld [vmem:[%s1456_s0 + $0x40] sm:$0xff]  ;;  %v282_v26 = vsel %vm50_vm0, %v240_v22, 0.0 }
  0x1e   :  { %v63_v25 = vsel %vm50_vm0, %v1100_v23, 0.0  ;;  %v167_v30 = vmul.f32 %v1100_v23, %v1100_v23 }
  0x23   :  { %183 = vadd.xlane.f32.xlu1 %v182_v27  ;;  %180 = vadd.xlane.f32.xlu0 %v179_v28  ;;  %v66_v27 = vsel %vm50_vm0, %v1105_v24, 0.0  ;;  %v1115_v28 = vld [vmem:[%s1456_s0 + $0x58] sm:$0xff] }
  0x24   :  { %v232_v42 = vmul.f32 %v1115_v28, %v1115_v28 }
  0x25   :  { %244 = vadd.xlane.f32.xlu2 %v243_v29  ;;  %v1120_v29 = vld [vmem:[%s1456_s0 + $0x48] sm:$0xff] }
  0x26   :  { %v231_v38 = vmul.f32 %v1120_v29, %v1120_v29 }
  0x28   :  { %v255_v44 = vsel %vm50_vm0, %v231_v38, 0.0 }
  0x2b   :  { %82 = vadd.xlane.f32.xlu1 %v81_v33  ;;  %247 = vadd.xlane.f32.xlu0 %v246_v34  ;;  %v114_v33 = vsel %vm50_vm0, %v1115_v28, 0.0  ;;  %v111_v34 = vsel %vm50_vm0, %v1120_v29, 0.0 }
  0x2d   :  { %85 = vadd.xlane.f32.xlu2 %v84_v35  ;;  %v191_v35 = vsel %vm50_vm0, %v167_v30, 0.0 }
  0x33   :  { %133 = vadd.xlane.f32.xlu1 %v132_v39  ;;  %130 = vadd.xlane.f32.xlu0 %v129_v40  ;;  %v168_v39 = vmul.f32 %v1105_v24, %v1105_v24 }
  0x35   :  { %210 = vadd.xlane.f32.xlu2 %v209_v41 }
  0x3b   :  { %274 = vadd.xlane.f32.xlu1 %v273_v45  ;;  %213 = vadd.xlane.f32.xlu0 %v212_v46  ;;  %v194_v45 = vsel %vm50_vm0, %v168_v39, 0.0  ;;  %v258_v46 = vsel %vm50_vm0, %v232_v42, 0.0  ;;  %v241_v42 = vmul.f32 %v1151_v54, %v1151_v54 }
  0x3d   :  { %277 = vadd.xlane.f32.xlu2 %v276_v47  ;;  %v1141_v47 = vld [vmem:[%s1456_s0 + $0xf0] sm:$0xff] }
  0x43   :  { %61 = vadd.xlane.f32.xlu1 %v60_v51  ;;  %58 = vadd.xlane.f32.xlu0 %v57_v52  ;;  %v1146_v51 = vld [vmem:[%s1456_s0 + $0xe0] sm:$0xff] }
  0x45   :  { %106 = vadd.xlane.f32.xlu2 %v105_v53 }
  0x4b   :  { %186 = vadd.xlane.f32.xlu1 %v185_v57  ;;  %109 = vadd.xlane.f32.xlu0 %v108_v58  ;;  %v96_v57 = vsel %vm50_vm0, %v1141_v47, 0.0  ;;  %v93_v58 = vsel %vm50_vm0, %v1146_v51, 0.0 }
  0x4d   :  { %189 = vadd.xlane.f32.xlu2 %v188_v59 }
  0x53   :  { %253 = vadd.xlane.f32.xlu1 %v252_v63  ;;  %250 = vadd.xlane.f32.xlu0 %v249_v2  ;;  %v627_v63 = vld [vmem:[%s1458_s1] sm:$0xf]  ;;  %v141_v2 = vsel %vm50_vm0, %v1151_v54, 0.0 }
  0x55   :  { %88 = vadd.xlane.f32.xlu2 %v87_v3  ;;  %v655_v3 = vsel %vm653_vm1, %v628_v61, 0  ;;  %v1202_v61 = vld [vmem:[%s1456_s0 + $0x68] sm:$0xff] }
  0x56   :  { %838 = vmatpush.bf16.msra.mxu2 %v655_v3  ;;  %664 = vmatpush.bf16.msra.mxu0 %v655_v3 }
  0x5b   :  { %136 = vadd.xlane.f32.xlu1 %v135_v9  ;;  %91 = vadd.xlane.f32.xlu0 %v90_v10  ;;  %v731_v9 = vsel %vm653_vm1, %v627_v63, 0  ;;  %v177_v10 = vmul.f32 %v1146_v51, %v1146_v51  ;;  %v1207_v63 = vld [vmem:[%s1456_s0 + $0x70] sm:$0xff] }
  0x5c   :  { %839 = vmatpush.bf16.msra.mxu3 %v731_v9  ;;  %740 = vmatpush.bf16.msra.mxu1 %v731_v9 }
  0x5d   :  { %139 = vadd.xlane.f32.xlu2 %v138_v11 }
  0x63   :  { %219 = vadd.xlane.f32.xlu1 %v218_v16  ;;  %216 = vadd.xlane.f32.xlu0 %v215_v17  ;;  %v178_v17 = vmul.f32 %v1141_v47, %v1141_v47 }
  0x65   :  { %280 = vadd.xlane.f32.xlu2 %v279_v21  ;;  %v224_v38 = vsel %vm50_vm0, %v178_v17, 0.0  ;;  %v1214_v17 = vld [vmem:[%s1456_s0 + $0x78] sm:$0xff] }
  0x6b   :  { %64 = vadd.xlane.f32.xlu1 %v63_v25  ;;  %283 = vadd.xlane.f32.xlu0 %v282_v26  ;;  %v221_v26 = vsel %vm50_vm0, %v177_v10, 0.0 }
  0x6d   :  { %67 = vadd.xlane.f32.xlu2 %v66_v27  ;;  %v144_v27 = vsel %vm50_vm0, %v1174_v13, 0.0 }
  0x73   :  { %115 = vadd.xlane.f32.xlu1 %v114_v33  ;;  %112 = vadd.xlane.f32.xlu0 %v111_v34 }
  0x75   :  { %192 = vadd.xlane.f32.xlu2 %v191_v35 }
  0x76   :  { %v125_v40 = vpop.xlane.xlu1 %124  ;;  %v77_v41 = vpop.xlane.xlu0 %76 }
  0x77   :  { %v155_v59 = vadd.f32 %v125_v40, %v77_v41  ;;  %v242_v41 = vmul.f32 %v1174_v13, %v1174_v13 }
  0x78   :  { %v205_v43 = vpop.xlane.xlu2 %204 }
  0x79   :  { %v1167_v11 = vmul.f32 0.0625, %v155_v59 }
  0x7b   :  { %256 = vadd.xlane.f32.xlu1 %v255_v44  ;;  %195 = vadd.xlane.f32.xlu0 %v194_v45  ;;  %v347_v34 = vmul.f32 %v1167_v11, %v1167_v11 }
  0x7d   :  { %259 = vadd.xlane.f32.xlu2 %v258_v46 }
  0x7e   :  { %v128_v52 = vpop.xlane.xlu1 %127  ;;  %v80_v53 = vpop.xlane.xlu0 %79 }
  0x7f   :  { %v156_v60 = vadd.f32 %v128_v52, %v80_v53  ;;  %v1193_v52 = vld [vmem:[%s1456_s0 + $0x60] sm:$0xff] }
  0x80   :  { %v208_v56 = vpop.xlane.xlu2 %207 }
  0x81   :  { %v1169_v12 = vmul.f32 0.0625, %v156_v60 }
  0x83   :  { %97 = vadd.xlane.f32.xlu1 %v96_v57  ;;  %94 = vadd.xlane.f32.xlu0 %v93_v58  ;;  %v348_v33 = vmul.f32 %v1169_v12, %v1169_v12  ;;  %v285_v57 = vsel %vm50_vm0, %v241_v42, 0.0  ;;  %v69_v58 = vsel %vm50_vm0, %v1193_v52, 0.0 }
  0x85   :  { %142 = vadd.xlane.f32.xlu2 %v141_v2 }
  0x86   :  { %v272_v15 = vpop.xlane.xlu1 %271  ;;  %v269_v16 = vpop.xlane.xlu0 %268 }
  0x87   :  { %v300_v21 = vadd.f32 %v272_v15, %v208_v56  ;;  %v299_v22 = vadd.f32 %v269_v16, %v205_v43  ;;  %v288_v56 = vsel %vm50_vm0, %v242_v41, 0.0 }
  0x88   :  { %v53_v25 = vpop.xlane.xlu2 %52 }
  0x89   :  { %v332_v30 = vmul.f32 0.0625, %v300_v21  ;;  %v331_v35 = vmul.f32 0.0625, %v299_v22 }
  0x8b   :  { %v364_v39 = vsub.f32 %v332_v30, %v348_v33  ;;  %v363_v40 = vsub.f32 %v331_v35, %v347_v34  ;;  %222 = vadd.xlane.f32.xlu1 %v221_v26  ;;  %145 = vadd.xlane.f32.xlu0 %v144_v27  ;;  %v72_v26 = vsel %vm50_vm0, %v1207_v63, 0.0  ;;  %v555_v34 = vsub.f32 %v906_v1, %v1167_v11 }
  0x8c   :  { %v595_v35 = vsub.f32 %v901_v0, %v1167_v11  ;;  %v233_v1 = vmul.f32 %v1202_v61, %v1202_v61  ;;  %v170_v0 = vmul.f32 %v1207_v63, %v1207_v63 }
  0x8d   :  { %v380_v43 = vadd.f32 1e-05, %v364_v39  ;;  %v379_v44 = vadd.f32 1e-05, %v363_v40  ;;  %225 = vadd.xlane.f32.xlu2 %v224_v38  ;;  %v120_v39 = vsel %vm50_vm0, %v1214_v17, 0.0 }
  0x8e   :  { %v56_v45 = vpop.xlane.xlu0 %55  ;;  %v101_v46 = vpop.xlane.xlu1 %100 }
  0x8f   :  { %841 = vrsqrt.f32 %v380_v43  ;;  %v147_v59 = vadd.f32 %v101_v46, %v53_v25  ;;  %v117_v25 = vsel %vm50_vm0, %v1202_v61, 0.0  ;;  %vm483_vm4 = vweird.f32 %v380_v43 }
  0x90   :  { %843 = vrsqrt.f32 %v379_v44  ;;  %v104_v53 = vpop.xlane.xlu2 %103  ;;  %vm473_vm6 = vweird.f32 %v379_v44 }
  0x91   :  { %v1209_v16 = vmul.f32 0.0625, %v147_v59  ;;  %v148_v30 = vadd.f32 %v104_v53, %v56_v45  ;;  %v169_v45 = vmul.f32 %v1193_v52, %v1193_v52 }
  0x93   :  { %289 = vadd.xlane.f32.xlu1 %v288_v56  ;;  %286 = vadd.xlane.f32.xlu0 %v285_v57  ;;  %v339_v41 = vmul.f32 %v1209_v16, %v1209_v16  ;;  %v1234_v53 = vmul.f32 0.0625, %v148_v30  ;;  %v556_v57 = vsub.f32 %v917_v5, %v1169_v12  ;;  %v261_v5 = vsel %vm50_vm0, %v233_v1, 0.0 }
  0x94   :  { %v200_v30 = vsel %vm50_vm0, %v170_v0, 0.0 }
  0x95   :  { %v842_v60 = vpop.eup %841  ;;  %70 = vadd.xlane.f32.xlu2 %v69_v58  ;;  %v596_v58 = vsub.f32 %v923_v7, %v1169_v12  ;;  %v340_v12 = vmul.f32 %v1234_v53, %v1234_v53 }
  0x96   :  { %v844_v2 = vpop.eup %843  ;;  %v478_v3 = vmul.f32 %v842_v60, %v380_v43  ;;  %v184_v9 = vpop.xlane.xlu1 %183  ;;  %vm484_vm2 = vweird.f32 %v842_v60 }
  0x97   :  { %v181_v10 = vpop.xlane.xlu0 %180  ;;  %v468_v15 = vmul.f32 %v844_v2, %v379_v44  ;;  %vm474_vm3 = vweird.f32 %v844_v2  ;;  %vm485_vm5 = vmor %vm483_vm4, %vm484_vm2 }
  0x98   :  { %v479_v21 = vmul.f32 %v842_v60, %v478_v3  ;;  %v245_v22 = vpop.xlane.xlu2 %244  ;;  %vm475_vm7 = vmor %vm473_vm6, %vm474_vm3 }
  0x99   :  { %v469_v27 = vmul.f32 %v844_v2, %v468_v15  ;;  %v291_v33 = vadd.f32 %v245_v22, %v181_v10 }
  0x9a   :  { %v480_v38 = vmul.f32 0.5, %v479_v21 }
  0x9b   :  { %v470_v40 = vmul.f32 0.5, %v469_v27  ;;  %v323_v42 = vmul.f32 0.0625, %v291_v33  ;;  %118 = vadd.xlane.f32.xlu1 %v117_v25  ;;  %73 = vadd.xlane.f32.xlu0 %v72_v26  ;;  %v197_v26 = vsel %vm50_vm0, %v169_v45, 0.0 }
  0x9c   :  { %v481_v46 = vsub.f32 1.5, %v480_v38 }
  0x9d   :  { %v471_v11 = vsub.f32 1.5, %v470_v40  ;;  %v355_v56 = vsub.f32 %v323_v42, %v339_v41  ;;  %121 = vadd.xlane.f32.xlu2 %v120_v39 }
  0x9e   :  { %v83_v59 = vpop.xlane.xlu1 %82  ;;  %v482_v10 = vmul.f32 %v842_v60, %v481_v46 }
  0x9f   :  { %v248_v3 = vpop.xlane.xlu0 %247  ;;  %v371_v15 = vadd.f32 1e-05, %v355_v56  ;;  %v472_v22 = vmul.f32 %v844_v2, %v471_v11 }
  0xa0   :  { %v292_v21 = vadd.f32 %v248_v3, %v184_v9  ;;  %v86_v25 = vpop.xlane.xlu2 %85  ;;  %v486_v27 = vsel %vm485_vm5, %v842_v60, %v482_v10  ;;  %v234_v60 = vmul.f32 %v1214_v17, %v1214_v17 }
  0xa1   :  { %845 = vrsqrt.f32 %v371_v15  ;;  %v476_v43 = vsel %vm475_vm7, %v844_v2, %v472_v22  ;;  %v612_v33 = vmul.f32 %v596_v58, %v486_v27  ;;  %v572_v38 = vmul.f32 %v556_v57, %v486_v27 }
  0xa2   :  { %v324_v7 = vmul.f32 0.0625, %v292_v21  ;;  %v611_v44 = vmul.f32 %v595_v35, %v476_v43  ;;  %v571_v9 = vmul.f32 %v555_v34, %v476_v43  ;;  %v264_v1 = vsel %vm50_vm0, %v234_v60, 0.0 }
  0xa3   :  { %198 = vadd.xlane.f32.xlu0 %v197_v26  ;;  %201 = vadd.xlane.f32.xlu1 %v200_v30  ;;  %vm393_vm9 = vweird.f32 %v371_v15 }
  0xa4   :  { %v356_v39 = vsub.f32 %v324_v7, %v340_v12  ;;  %v623_v40 = vpack.c.bf16 %v612_v33, %v611_v44  ;;  %v583_v41 = vpack.c.bf16 %v572_v38, %v571_v9 }
  0xa5   :  { %262 = vadd.xlane.f32.xlu2 %v261_v5 }
  0xa6   :  { %v372_v42 = vadd.f32 1e-05, %v356_v39  ;;  %826 = vmatmul.msk.bf16.vlgmr.msra.gmra.mxu2 %vm50_vm0, %v623_v40  ;;  %834 = vmatmul.msk.bf16.vlgmr.msra.gmra.mxu3 %vm50_vm0, %v583_v41  ;;  %v134_v45 = vpop.xlane.xlu1 %133 }
  0xa7   :  { %v131_v2 = vpop.xlane.xlu0 %130  ;;  %v846_v35 = vpop.eup %845  ;;  %v158_v56 = vadd.f32 %v134_v45, %v86_v25 }
  0xa8   :  { %847 = vrsqrt.f32 %v372_v42  ;;  %v388_v34 = vmul.f32 %v846_v35, %v371_v15  ;;  %v211_v46 = vpop.xlane.xlu2 %210  ;;  %v157_v0 = vadd.f32 %v131_v2, %v83_v59  ;;  %vm394_vm8 = vweird.f32 %v846_v35 }
  0xa9   :  { %v1253_v27 = vmul.f32 0.0625, %v158_v56  ;;  %vm395_vm11 = vmor %vm393_vm9, %vm394_vm8  ;;  %vm403_vm12 = vweird.f32 %v372_v42  ;;  %v547_v15 = vsub.f32 %v939_v14, %v1209_v16 }
  0xaa   :  { %v389_v11 = vmul.f32 %v846_v35, %v388_v34  ;;  %v1251_v3 = vmul.f32 0.0625, %v157_v0 }
  0xab   :  { %265 = vadd.xlane.f32.xlu0 %v264_v1  ;;  %v350_v9 = vmul.f32 %v1253_v27, %v1253_v27  ;;  %v588_v1 = vsub.f32 %v958_v20, %v1234_v53 }
  0xac   :  { %v390_v57 = vmul.f32 0.5, %v389_v11  ;;  %v349_v59 = vmul.f32 %v1251_v3, %v1251_v3  ;;  %v548_v11 = vsub.f32 %v948_v18, %v1234_v53 }
  0xae   :  { %v848_v58 = vpop.eup %847  ;;  %v391_v10 = vsub.f32 1.5, %v390_v57  ;;  %v275_v22 = vpop.xlane.xlu1 %274 }
  0xaf   :  { %v398_v21 = vmul.f32 %v848_v58, %v372_v42  ;;  %v214_v26 = vpop.xlane.xlu0 %213  ;;  %v301_v5 = vadd.f32 %v275_v22, %v211_v46  ;;  %vm404_vm10 = vweird.f32 %v848_v58  ;;  %v587_v46 = vsub.f32 %v953_v19, %v1209_v16 }
  0xb0   :  { %v278_v7 = vpop.xlane.xlu2 %277  ;;  %v392_v44 = vmul.f32 %v846_v35, %v391_v10  ;;  %vm405_vm13 = vmor %vm403_vm12, %vm404_vm10 }
  0xb1   :  { %v399_v30 = vmul.f32 %v848_v58, %v398_v21  ;;  %v333_v12 = vmul.f32 0.0625, %v301_v5  ;;  %v302_v43 = vadd.f32 %v278_v7, %v214_v26 }
  0xb2   :  { %v396_v2 = vsel %vm395_vm11, %v846_v35, %v392_v44  ;;  %v558_v44 = vsub.f32 %v985_v32, %v1253_v27  ;;  %v597_v32 = vsub.f32 %v1000_v37, %v1251_v3 }
  0xb3   :  { %v400_v25 = vmul.f32 0.5, %v399_v30  ;;  %v365_v33 = vsub.f32 %v333_v12, %v349_v59  ;;  %v334_v38 = vmul.f32 0.0625, %v302_v43  ;;  %v603_v35 = vmul.f32 %v587_v46, %v396_v2 }
  0xb4   :  { %v563_v10 = vmul.f32 %v547_v15, %v396_v2 }
  0xb5   :  { %v401_v39 = vsub.f32 1.5, %v400_v25  ;;  %v381_v40 = vadd.f32 1e-05, %v365_v33  ;;  %v366_v41 = vsub.f32 %v334_v38, %v350_v9 }
  0xb6   :  { %v62_v60 = vpop.xlane.xlu1 %61 }
  0xb7   :  { %v59_v45 = vpop.xlane.xlu0 %58  ;;  %v402_v34 = vmul.f32 %v848_v58, %v401_v39  ;;  %849 = vrsqrt.f32 %v381_v40  ;;  %v382_v0 = vadd.f32 1e-05, %v366_v41  ;;  %vm493_vm15 = vweird.f32 %v381_v40 }
  0xb8   :  { %v107_v42 = vpop.xlane.xlu2 %106 }
  0xb9   :  { %v406_v56 = vsel %vm405_vm13, %v848_v58, %v402_v34  ;;  %851 = vrsqrt.f32 %v382_v0  ;;  %v149_v58 = vadd.f32 %v107_v42, %v59_v45  ;;  %v557_v45 = vsub.f32 %v980_v31, %v1251_v3 }
  0xba   :  { %v604_v57 = vmul.f32 %v588_v1, %v406_v56  ;;  %v564_v21 = vmul.f32 %v548_v11, %v406_v56  ;;  %vm503_vm3 = vweird.f32 %v382_v0 }
  0xbb   :  { %v1271_v33 = vmul.f32 0.0625, %v149_v58 }
  0xbc   :  { %v619_v19 = vpack.c.bf16 %v604_v57, %v603_v35  ;;  %v579_v22 = vpack.c.bf16 %v564_v21, %v563_v10 }
  0xbd   :  { %v850_v26 = vpop.eup %849 }
  0xbe   :  { %822 = vmatmul.msk.bf16.vlgmr.msra.gmra.mxu0 %vm50_vm0, %v619_v19  ;;  %v488_v20 = vmul.f32 %v850_v26, %v381_v40  ;;  %830 = vmatmul.msk.bf16.vlgmr.msra.gmra.mxu1 %vm50_vm0, %v579_v22  ;;  %v187_v5 = vpop.xlane.xlu1 %186  ;;  %vm494_vm14 = vweird.f32 %v850_v26 }
  0xbf   :  { %v110_v14 = vpop.xlane.xlu0 %109  ;;  %v852_v16 = vpop.eup %851  ;;  %vm495_vm2 = vmor %vm493_vm15, %vm494_vm14 }
  0xc0   :  { %v489_v30 = vmul.f32 %v850_v26, %v488_v20  ;;  %v498_v18 = vmul.f32 %v852_v16, %v382_v0  ;;  %v190_v53 = vpop.xlane.xlu2 %189  ;;  %v150_v7 = vadd.f32 %v110_v14, %v62_v60  ;;  %vm504_vm1 = vweird.f32 %v852_v16 }
  0xc1   :  { %v598_v60 = vsub.f32 %v995_v36, %v1253_v27  ;;  %vm505_vm4 = vmor %vm503_vm3, %vm504_vm1  ;;  %v341_v36 = vmul.f32 %v1271_v33, %v1271_v33 }
  0xc2   :  { %v490_v12 = vmul.f32 0.5, %v489_v30  ;;  %v499_v59 = vmul.f32 %v852_v16, %v498_v18  ;;  %v1273_v9 = vmul.f32 0.0625, %v150_v7 }
  0xc4   :  { %v491_v43 = vsub.f32 1.5, %v490_v12  ;;  %v500_v25 = vmul.f32 0.5, %v499_v59  ;;  %v342_v42 = vmul.f32 %v1273_v9, %v1273_v9 }
  0xc6   :  { %v501_v38 = vsub.f32 1.5, %v500_v25  ;;  %v254_v39 = vpop.xlane.xlu1 %253  ;;  %v492_v2 = vmul.f32 %v850_v26, %v491_v43 }
  0xc7   :  { %v251_v41 = vpop.xlane.xlu0 %250  ;;  %v294_v34 = vadd.f32 %v254_v39, %v190_v53 }
  0xc8   :  { %v293_v46 = vadd.f32 %v251_v41, %v187_v5  ;;  %v89_v1 = vpop.xlane.xlu2 %88  ;;  %v496_v40 = vsel %vm495_vm2, %v850_v26, %v492_v2  ;;  %v502_v15 = vmul.f32 %v852_v16, %v501_v38 }
  0xc9   :  { %v326_v11 = vmul.f32 0.0625, %v294_v34  ;;  %v613_v27 = vmul.f32 %v597_v32, %v496_v40  ;;  %v573_v35 = vmul.f32 %v557_v45, %v496_v40 }
  0xca   :  { %v325_v56 = vmul.f32 0.0625, %v293_v46  ;;  %v506_v31 = vsel %vm505_vm4, %v852_v16, %v502_v15 }
  0xcb   :  { %v358_v57 = vsub.f32 %v326_v11, %v342_v42  ;;  %v614_v21 = vmul.f32 %v598_v60, %v506_v31  ;;  %v574_v37 = vmul.f32 %v558_v44, %v506_v31  ;;  %v589_v31 = vsub.f32 %v1031_v50, %v1271_v33 }
  0xcc   :  { %v357_v10 = vsub.f32 %v325_v56, %v341_v36 }
  0xcd   :  { %v374_v3 = vadd.f32 1e-05, %v358_v57  ;;  %v624_v19 = vpack.c.bf16 %v614_v21, %v613_v27  ;;  %v584_v22 = vpack.c.bf16 %v574_v37, %v573_v35  ;;  %v550_v27 = vsub.f32 %v1021_v48, %v1273_v9 }
  0xce   :  { %v373_v0 = vadd.f32 1e-05, %v357_v10  ;;  %v137_v26 = vpop.xlane.xlu1 %136  ;;  %v590_v35 = vsub.f32 %v1044_v55, %v1273_v9 }
  0xcf   :  { %v92_v20 = vpop.xlane.xlu0 %91  ;;  %853 = vrsqrt.f32 %v374_v3  ;;  %827 = vmatmul.msk.bf16.gmra.mxu2 %vm50_vm0, %v624_v19  ;;  %835 = vmatmul.msk.bf16.gmra.mxu3 %vm50_vm0, %v584_v22  ;;  %v159_v14 = vadd.f32 %v137_v26, %v89_v1  ;;  %v549_v1 = vsub.f32 %v1026_v49, %v1271_v33  ;;  %vm423_vm7 = vweird.f32 %v374_v3 }
  0xd0   :  { %855 = vrsqrt.f32 %v373_v0  ;;  %v140_v5 = vpop.xlane.xlu2 %139  ;;  %vm413_vm9 = vweird.f32 %v373_v0 }
  0xd1   :  { %v1287_v12 = vmul.f32 0.0625, %v159_v14  ;;  %v160_v44 = vadd.f32 %v140_v5, %v92_v20 }
  0xd3   :  { %v351_v2 = vmul.f32 %v1287_v12, %v1287_v12  ;;  %v1291_v46 = vmul.f32 0.0625, %v160_v44 }
  0xd5   :  { %v854_v16 = vpop.eup %853  ;;  %v352_v21 = vmul.f32 %v1291_v46, %v1291_v46 }
  0xd6   :  { %v856_v30 = vpop.eup %855  ;;  %v418_v18 = vmul.f32 %v854_v16, %v374_v3  ;;  %v220_v53 = vpop.xlane.xlu1 %219  ;;  %vm424_vm5 = vweird.f32 %v854_v16 }
  0xd7   :  { %v217_v58 = vpop.xlane.xlu0 %216  ;;  %v408_v7 = vmul.f32 %v856_v30, %v373_v0  ;;  %vm414_vm6 = vweird.f32 %v856_v30  ;;  %vm425_vm8 = vmor %vm423_vm7, %vm424_vm5 }
  0xd8   :  { %v419_v59 = vmul.f32 %v854_v16, %v418_v18  ;;  %v281_v43 = vpop.xlane.xlu2 %280  ;;  %vm415_vm10 = vmor %vm413_vm9, %vm414_vm6 }
  0xd9   :  { %v409_v25 = vmul.f32 %v856_v30, %v408_v7  ;;  %v303_v38 = vadd.f32 %v281_v43, %v217_v58 }
  0xda   :  { %v420_v39 = vmul.f32 0.5, %v419_v59 }
  0xdb   :  { %v410_v41 = vmul.f32 0.5, %v409_v25  ;;  %v335_v60 = vmul.f32 0.0625, %v303_v38 }
  0xdc   :  { %v421_v45 = vsub.f32 1.5, %v420_v39 }
  0xdd   :  { %v411_v34 = vsub.f32 1.5, %v410_v41  ;;  %v367_v32 = vsub.f32 %v335_v60, %v351_v2 }
  0xde   :  { %v65_v40 = vpop.xlane.xlu1 %64  ;;  %v422_v11 = vmul.f32 %v854_v16, %v421_v45 }
  0xdf   :  { %v284_v15 = vpop.xlane.xlu0 %283  ;;  %v383_v42 = vadd.f32 1e-05, %v367_v32  ;;  %v412_v36 = vmul.f32 %v856_v30, %v411_v34 }
  0xe0   :  { %v304_v56 = vadd.f32 %v284_v15, %v220_v53  ;;  %v68_v49 = vpop.xlane.xlu2 %67  ;;  %v426_v57 = vsel %vm425_vm8, %v854_v16, %v422_v11 }
  0xe1   :  { %857 = vrsqrt.f32 %v383_v42  ;;  %v416_v37 = vsel %vm415_vm10, %v856_v30, %v412_v36  ;;  %v606_v0 = vmul.f32 %v590_v35, %v426_v57  ;;  %v566_v50 = vmul.f32 %v550_v27, %v426_v57 }
  0xe2   :  { %v336_v10 = vmul.f32 0.0625, %v304_v56  ;;  %v605_v3 = vmul.f32 %v589_v31, %v416_v37  ;;  %v565_v19 = vmul.f32 %v549_v1, %v416_v37  ;;  %vm513_vm12 = vweird.f32 %v383_v42 }
  0xe4   :  { %v368_v33 = vsub.f32 %v336_v10, %v352_v21  ;;  %v620_v22 = vpack.c.bf16 %v606_v0, %v605_v3  ;;  %v580_v48 = vpack.c.bf16 %v566_v50, %v565_v19  ;;  %v599_v10 = vsub.f32 %v1068_v4, %v1287_v12 }
  0xe5   :  { %v600_v21 = vsub.f32 %v1078_v8, %v1291_v46  ;;  %v560_v3 = vsub.f32 %v1073_v6, %v1291_v46 }
  0xe6   :  { %v384_v26 = vadd.f32 1e-05, %v368_v33  ;;  %823 = vmatmul.msk.bf16.gmra.mxu0 %vm50_vm0, %v620_v22  ;;  %831 = vmatmul.msk.bf16.gmra.mxu1 %vm50_vm0, %v580_v48  ;;  %v116_v55 = vpop.xlane.xlu1 %115 }
  0xe7   :  { %v113_v9 = vpop.xlane.xlu0 %112  ;;  %v858_v20 = vpop.eup %857  ;;  %v152_v18 = vadd.f32 %v116_v55, %v68_v49 }
  0xe8   :  { %859 = vrsqrt.f32 %v384_v26  ;;  %v508_v5 = vmul.f32 %v858_v20, %v383_v42  ;;  %v193_v14 = vpop.xlane.xlu2 %192  ;;  %v151_v16 = vadd.f32 %v113_v9, %v65_v40  ;;  %vm514_vm11 = vweird.f32 %v858_v20 }
  0xe9   :  { %v1308_v38 = vmul.f32 0.0625, %v152_v18  ;;  %vm515_vm14 = vmor %vm513_vm12, %vm514_vm11  ;;  %vm523_vm15 = vweird.f32 %v384_v26  ;;  %v559_v42 = vsub.f32 %v1059_v62, %v1287_v12 }
  0xea   :  { %v509_v30 = vmul.f32 %v858_v20, %v508_v5  ;;  %v1306_v7 = vmul.f32 0.0625, %v151_v16 }
  0xeb   :  { %v344_v15 = vmul.f32 %v1308_v38, %v1308_v38 }
  0xec   :  { %v510_v53 = vmul.f32 0.5, %v509_v30  ;;  %v343_v45 = vmul.f32 %v1306_v7, %v1306_v7 }
  0xee   :  { %v860_v58 = vpop.eup %859  ;;  %v511_v59 = vsub.f32 1.5, %v510_v53  ;;  %v257_v25 = vpop.xlane.xlu1 %256 }
  0xef   :  { %v518_v43 = vmul.f32 %v860_v58, %v384_v26  ;;  %v196_v44 = vpop.xlane.xlu0 %195  ;;  %v295_v39 = vadd.f32 %v257_v25, %v193_v14  ;;  %vm524_vm13 = vweird.f32 %v860_v58 }
  0xf0   :  { %v260_v2 = vpop.xlane.xlu2 %259  ;;  %v512_v1 = vmul.f32 %v858_v20, %v511_v59  ;;  %vm525_vm1 = vmor %vm523_vm15, %vm524_vm13 }
  0xf1   :  { %v519_v41 = vmul.f32 %v860_v58, %v518_v43  ;;  %v327_v60 = vmul.f32 0.0625, %v295_v39  ;;  %v296_v34 = vadd.f32 %v260_v2, %v196_v44  ;;  %v592_v2 = vsub.f32 %v1115_v28, %v1308_v38 }
  0xf2   :  { %v516_v49 = vsel %vm515_vm14, %v858_v20, %v512_v1 }
  0xf3   :  { %v520_v32 = vmul.f32 0.5, %v519_v41  ;;  %v359_v40 = vsub.f32 %v327_v60, %v343_v45  ;;  %v328_v11 = vmul.f32 0.0625, %v296_v34  ;;  %v615_v50 = vmul.f32 %v599_v10, %v516_v49 }
  0xf4   :  { %v575_v22 = vmul.f32 %v559_v42, %v516_v49  ;;  %v551_v60 = vsub.f32 %v1100_v23, %v1306_v7 }
  0xf5   :  { %v521_v56 = vsub.f32 1.5, %v520_v32  ;;  %v375_v36 = vadd.f32 1e-05, %v359_v40  ;;  %v360_v31 = vsub.f32 %v328_v11, %v344_v15 }
  0xf6   :  { %v98_v27 = vpop.xlane.xlu1 %97 }
  0xf7   :  { %v95_v35 = vpop.xlane.xlu0 %94  ;;  %v522_v57 = vmul.f32 %v860_v58, %v521_v56  ;;  %861 = vrsqrt.f32 %v375_v36  ;;  %v376_v37 = vadd.f32 1e-05, %v360_v31  ;;  %vm433_vm3 = vweird.f32 %v375_v36 }
  0xf8   :  { %v143_v0 = vpop.xlane.xlu2 %142 }
  0xf9   :  { %v526_v19 = vsel %vm525_vm1, %v860_v58, %v522_v57  ;;  %863 = vrsqrt.f32 %v376_v37  ;;  %v161_v5 = vadd.f32 %v143_v0, %v95_v35  ;;  %v552_v58 = vsub.f32 %v1105_v24, %v1308_v38 }
  0xfa   :  { %v616_v33 = vmul.f32 %v600_v21, %v526_v19  ;;  %v576_v48 = vmul.f32 %v560_v3, %v526_v19  ;;  %v591_v24 = vsub.f32 %v1120_v29, %v1306_v7  ;;  %vm443_vm6 = vweird.f32 %v376_v37 }
  0xfb   :  { %v1326_v59 = vmul.f32 0.0625, %v161_v5 }
  0xfc   :  { %v625_v4 = vpack.c.bf16 %v616_v33, %v615_v50  ;;  %v585_v26 = vpack.c.bf16 %v576_v48, %v575_v22 }
  0xfd   :  { %v862_v55 = vpop.eup %861  ;;  %v353_v28 = vmul.f32 %v1326_v59, %v1326_v59 }
  0xfe   :  { %828 = vmatmul.msk.bf16.gmra.mxu2 %vm50_vm0, %v625_v4  ;;  %v428_v8 = vmul.f32 %v862_v55, %v375_v36  ;;  %836 = vmatmul.msk.bf16.gmra.mxu3 %vm50_vm0, %v585_v26  ;;  %v223_v9 = vpop.xlane.xlu1 %222  ;;  %vm434_vm2 = vweird.f32 %v862_v55 }
  0xff   :  { %v146_v62 = vpop.xlane.xlu0 %145  ;;  %v864_v12 = vpop.eup %863  ;;  %vm435_vm5 = vmor %vm433_vm3, %vm434_vm2 }
 0x100   :  { %v429_v20 = vmul.f32 %v862_v55, %v428_v8  ;;  %v438_v6 = vmul.f32 %v864_v12, %v376_v37  ;;  %v226_v46 = vpop.xlane.xlu2 %225  ;;  %v162_v14 = vadd.f32 %v146_v62, %v98_v27  ;;  %vm444_vm4 = vweird.f32 %v864_v12 }
 0x101   :  { %vm445_vm7 = vmor %vm443_vm6, %vm444_vm4 }
 0x102   :  { %v430_v16 = vmul.f32 0.5, %v429_v20  ;;  %v439_v30 = vmul.f32 %v864_v12, %v438_v6  ;;  %v1328_v43 = vmul.f32 0.0625, %v162_v14 }
 0x104   :  { %v431_v18 = vsub.f32 1.5, %v430_v16  ;;  %v440_v53 = vmul.f32 0.5, %v439_v30  ;;  %v354_v11 = vmul.f32 %v1328_v43, %v1328_v43 }
 0x106   :  { %v441_v25 = vsub.f32 1.5, %v440_v53  ;;  %v290_v44 = vpop.xlane.xlu1 %289  ;;  %v432_v41 = vmul.f32 %v862_v55, %v431_v18  ;;  %v561_v18 = vsub.f32 %v1146_v51, %v1326_v59 }
 0x107   :  { %v287_v39 = vpop.xlane.xlu0 %286  ;;  %v306_v45 = vadd.f32 %v290_v44, %v226_v46 }
 0x108   :  { %v305_v34 = vadd.f32 %v287_v39, %v223_v9  ;;  %v71_v32 = vpop.xlane.xlu2 %70  ;;  %v436_v1 = vsel %vm435_vm5, %v862_v55, %v432_v41  ;;  %v442_v40 = vmul.f32 %v864_v12, %v441_v25  ;;  %v601_v41 = vsub.f32 %v1151_v54, %v1326_v59 }
 0x109   :  { %v338_v15 = vmul.f32 0.0625, %v306_v45  ;;  %v607_v38 = vmul.f32 %v591_v24, %v436_v1  ;;  %v567_v36 = vmul.f32 %v551_v60, %v436_v1  ;;  %v602_v60 = vsub.f32 %v1174_v13, %v1328_v43 }
 0x10a   :  { %v337_v56 = vmul.f32 0.0625, %v305_v34  ;;  %v446_v23 = vsel %vm445_vm7, %v864_v12, %v442_v40 }
 0x10b   :  { %v370_v31 = vsub.f32 %v338_v15, %v354_v11  ;;  %v608_v35 = vmul.f32 %v592_v2, %v446_v23  ;;  %v568_v29 = vmul.f32 %v552_v58, %v446_v23  ;;  %v562_v2 = vsub.f32 %v1141_v47, %v1328_v43 }
 0x10c   :  { %v369_v27 = vsub.f32 %v337_v56, %v353_v28  ;;  %v1364_v56 = vld [vmem:[%s1459_s3] ss:$0 sm:$0xff] }
 0x10d   :  { %v386_v7 = vadd.f32 1e-05, %v370_v31  ;;  %v621_v57 = vpack.c.bf16 %v608_v35, %v607_v38  ;;  %v581_v10 = vpack.c.bf16 %v568_v29, %v567_v36 }
 0x10e   :  { %v385_v49 = vadd.f32 1e-05, %v369_v27  ;;  %v119_v37 = vpop.xlane.xlu1 %118 }
 0x10f   :  { %v74_v21 = vpop.xlane.xlu0 %73  ;;  %865 = vrsqrt.f32 %v386_v7  ;;  %824 = vmatmul.msk.bf16.gmra.mxu0 %vm50_vm0, %v621_v57  ;;  %832 = vmatmul.msk.bf16.gmra.mxu1 %vm50_vm0, %v581_v10  ;;  %v153_v3 = vadd.f32 %v119_v37, %v71_v32  ;;  %vm543_vm10 = vweird.f32 %v386_v7 }
 0x110   :  { %867 = vrsqrt.f32 %v385_v49  ;;  %v122_v42 = vpop.xlane.xlu2 %121  ;;  %vm533_vm12 = vweird.f32 %v385_v49 }
 0x111   :  { %v1342_v48 = vmul.f32 0.0625, %v153_v3  ;;  %v154_v8 = vadd.f32 %v122_v42, %v74_v21 }
 0x113   :  { %v345_v20 = vmul.f32 %v1342_v48, %v1342_v48  ;;  %v1346_v16 = vmul.f32 0.0625, %v154_v8 }
 0x115   :  { %v866_v0 = vpop.eup %865  ;;  %v346_v34 = vmul.f32 %v1346_v16, %v1346_v16 }
 0x116   :  { %v868_v19 = vpop.eup %867  ;;  %v538_v50 = vmul.f32 %v866_v0, %v386_v7  ;;  %vm544_vm8 = vweird.f32 %v866_v0  ;;  %v202_v5 = vpop.xlane.xlu1 %201 }
 0x117   :  { %v199_v33 = vpop.xlane.xlu0 %198  ;;  %v528_v22 = vmul.f32 %v868_v19, %v385_v49  ;;  %vm534_vm9 = vweird.f32 %v868_v19  ;;  %vm545_vm11 = vmor %vm543_vm10, %vm544_vm8 }
 0x118   :  { %v539_v4 = vmul.f32 %v866_v0, %v538_v50  ;;  %v263_v26 = vpop.xlane.xlu2 %262  ;;  %vm535_vm13 = vmor %vm533_vm12, %vm534_vm9 }
 0x119   :  { %v529_v55 = vmul.f32 %v868_v19, %v528_v22  ;;  %v297_v9 = vadd.f32 %v263_v26, %v199_v33  ;;  %v553_v33 = vsub.f32 %v1193_v52, %v1342_v48  ;;  %v593_v22 = vsub.f32 %v1202_v61, %v1342_v48 }
 0x11a   :  { %v540_v62 = vmul.f32 0.5, %v539_v4  ;;  %v554_v4 = vsub.f32 %v1207_v63, %v1346_v16  ;;  %v594_v26 = vsub.f32 %v1214_v17, %v1346_v16 }
 0x11b   :  { %v530_v12 = vmul.f32 0.5, %v529_v55  ;;  %v329_v6 = vmul.f32 0.0625, %v297_v9 }
 0x11c   :  { %v541_v46 = vsub.f32 1.5, %v540_v62 }
 0x11d   :  { %v531_v14 = vsub.f32 1.5, %v530_v12  ;;  %v361_v30 = vsub.f32 %v329_v6, %v345_v20 }
 0x11e   :  { %v542_v58 = vmul.f32 %v866_v0, %v541_v46 }
 0x11f   :  { %v266_v53 = vpop.xlane.xlu0 %265  ;;  %v377_v25 = vadd.f32 1e-05, %v361_v30  ;;  %v532_v39 = vmul.f32 %v868_v19, %v531_v14 }
 0x120   :  { %v298_v44 = vadd.f32 %v266_v53, %v202_v5  ;;  %v546_v51 = vsel %vm545_vm11, %v866_v0, %v542_v58 }
 0x121   :  { %869 = vrsqrt.f32 %v377_v25  ;;  %v536_v24 = vsel %vm535_vm13, %v868_v19, %v532_v39  ;;  %v618_v1 = vmul.f32 %v602_v60, %v546_v51  ;;  %v578_v15 = vmul.f32 %v562_v2, %v546_v51 }
 0x122   :  { %v330_v45 = vmul.f32 0.0625, %v298_v44  ;;  %v617_v32 = vmul.f32 %v601_v41, %v536_v24  ;;  %v577_v40 = vmul.f32 %v561_v18, %v536_v24  ;;  %vm453_vm15 = vweird.f32 %v377_v25 }
 0x124   :  { %v362_v54 = vsub.f32 %v330_v45, %v346_v34  ;;  %v626_v59 = vpack.c.bf16 %v618_v1, %v617_v32  ;;  %v586_v11 = vpack.c.bf16 %v578_v15, %v577_v40 }
 0x126   :  { %v378_v47 = vadd.f32 1e-05, %v362_v54  ;;  %829 = vmatmul.msk.bf16.gmra.mxu2 %vm50_vm0, %v626_v59  ;;  %837 = vmatmul.msk.bf16.gmra.mxu3 %vm50_vm0, %v586_v11 }
 0x127   :  { %v870_v13 = vpop.eup %869 }
 0x128   :  { %871 = vrsqrt.f32 %v378_v47  ;;  %v448_v43 = vmul.f32 %v870_v13, %v377_v25  ;;  %vm454_vm14 = vweird.f32 %v870_v13  ;;  %vm463_vm3 = vweird.f32 %v378_v47 }
 0x129   :  { %v686_v28 = vpop.f32.mrf.mxu2  ;;  %v762_v23 = vpop.f32.mrf.mxu3  ;;  %vm455_vm2 = vmor %vm453_vm15, %vm454_vm14 }
 0x12a   :  { %v449_v38 = vmul.f32 %v870_v13, %v448_v43  ;;  %v763_v36 = vadd.f32 %v762_v23, %v686_v28 }
 0x12c   :  { %v450_v31 = vmul.f32 0.5, %v449_v38  ;;  %v794_v27 = vadd.f32 %v1364_v56, %v763_v36 }
 0x12e   :  { %v872_v35 = vpop.eup %871  ;;  %v451_v29 = vsub.f32 1.5, %v450_v31  ;;  %810 = vst.msk [vmem:[%s1460_s4 + $0x40] sm:$0xff] %vm50_vm0, %v794_v27 }
 0x12f   :  { %v458_v7 = vmul.f32 %v872_v35, %v378_v47  ;;  %vm464_vm1 = vweird.f32 %v872_v35 }
 0x130   :  { %v452_v42 = vmul.f32 %v870_v13, %v451_v29  ;;  %vm465_vm4 = vmor %vm463_vm3, %vm464_vm1 }
 0x131   :  { %v459_v49 = vmul.f32 %v872_v35, %v458_v7  ;;  %v688_v57 = vpop.f32.mrf.mxu2  ;;  %v764_v10 = vpop.f32.mrf.mxu3 }
 0x132   :  { %v765_v37 = vadd.f32 %v764_v10, %v688_v57  ;;  %v456_v19 = vsel %vm455_vm2, %v870_v13, %v452_v42 }
 0x133   :  { %v460_v21 = vmul.f32 0.5, %v459_v49  ;;  %v609_v8 = vmul.f32 %v593_v22, %v456_v19  ;;  %v569_v62 = vmul.f32 %v553_v33, %v456_v19 }
 0x134   :  { %v795_v0 = vadd.f32 %v1364_v56, %v765_v37 }
 0x135   :  { %v461_v3 = vsub.f32 1.5, %v460_v21 }
 0x136   :  { %811 = vst.msk [vmem:[%s1460_s4 + $0x48] sm:$0xff] %vm50_vm0, %v795_v0 }
 0x137   :  { %v462_v50 = vmul.f32 %v872_v35, %v461_v3 }
 0x139   :  { %v466_v55 = vsel %vm465_vm4, %v872_v35, %v462_v50 }
 0x13a   :  { %v610_v9 = vmul.f32 %v594_v26, %v466_v55  ;;  %v570_v12 = vmul.f32 %v554_v4, %v466_v55 }
 0x13b   :  { %v666_v20 = vpop.f32.mrf.mxu0  ;;  %v742_v6 = vpop.f32.mrf.mxu1 }
 0x13c   :  { %v622_v46 = vpack.c.bf16 %v610_v9, %v609_v8  ;;  %v582_v5 = vpack.c.bf16 %v570_v12, %v569_v62  ;;  %v743_v52 = vadd.f32 %v742_v6, %v666_v20 }
 0x13e   :  { %825 = vmatmul.msk.bf16.gmra.mxu0 %vm50_vm0, %v622_v46  ;;  %833 = vmatmul.msk.bf16.gmra.mxu1 %vm50_vm0, %v582_v5  ;;  %v786_v61 = vadd.f32 %v1364_v56, %v743_v52 }
 0x140   :  { %802 = vst.msk [vmem:[%s1460_s4] sm:$0xff] %vm50_vm0, %v786_v61 }
 0x143   :  { %v668_v63 = vpop.f32.mrf.mxu0  ;;  %v744_v17 = vpop.f32.mrf.mxu1 }
 0x144   :  { %v745_v48 = vadd.f32 %v744_v17, %v668_v63 }
 0x146   :  { %v787_v14 = vadd.f32 %v1364_v56, %v745_v48 }
 0x148   :  { %803 = vst.msk [vmem:[%s1460_s4 + $0x8] sm:$0xff] %vm50_vm0, %v787_v14 }
 0x152   :  { %v691_v16 = vpop.f32.mrf.mxu2  ;;  %v767_v30 = vpop.f32.mrf.mxu3 }
 0x153   :  { %v768_v18 = vadd.f32 %v767_v30, %v691_v16 }
 0x155   :  { %v796_v53 = vadd.f32 %v1364_v56, %v768_v18 }
 0x157   :  { %812 = vst.msk [vmem:[%s1460_s4 + $0x50] sm:$0xff] %vm50_vm0, %v796_v53 }
 0x15a   :  { %v693_v58 = vpop.f32.mrf.mxu2  ;;  %v769_v25 = vpop.f32.mrf.mxu3 }
 0x15b   :  { %v770_v44 = vadd.f32 %v769_v25, %v693_v58 }
 0x15d   :  { %v797_v39 = vadd.f32 %v1364_v56, %v770_v44 }
 0x15f   :  { %813 = vst.msk [vmem:[%s1460_s4 + $0x58] sm:$0xff] %vm50_vm0, %v797_v39 }
 0x163   :  { %v671_v41 = vpop.f32.mrf.mxu0  ;;  %v747_v2 = vpop.f32.mrf.mxu1 }
 0x164   :  { %v748_v60 = vadd.f32 %v747_v2, %v671_v41 }
 0x166   :  { %v788_v51 = vadd.f32 %v1364_v56, %v748_v60 }
 0x168   :  { %804 = vst.msk [vmem:[%s1460_s4 + $0x10] sm:$0xff] %vm50_vm0, %v788_v51 }
 0x16b   :  { %v673_v45 = vpop.f32.mrf.mxu0  ;;  %v749_v34 = vpop.f32.mrf.mxu1 }
 0x16c   :  { %v750_v24 = vadd.f32 %v749_v34, %v673_v45 }
 0x16e   :  { %v789_v32 = vadd.f32 %v1364_v56, %v750_v24 }
 0x170   :  { %805 = vst.msk [vmem:[%s1460_s4 + $0x18] sm:$0xff] %vm50_vm0, %v789_v32 }
 0x181   :  { %v696_v1 = vpop.f32.mrf.mxu2  ;;  %v772_v40 = vpop.f32.mrf.mxu3 }
 0x182   :  { %v773_v15 = vadd.f32 %v772_v40, %v696_v1 }
 0x184   :  { %v798_v54 = vadd.f32 %v1364_v56, %v773_v15 }
 0x186   :  { %814 = vst.msk [vmem:[%s1460_s4 + $0x60] sm:$0xff] %vm50_vm0, %v798_v54 }
 0x189   :  { %v698_v59 = vpop.f32.mrf.mxu2  ;;  %v774_v11 = vpop.f32.mrf.mxu3 }
 0x18a   :  { %v775_v47 = vadd.f32 %v774_v11, %v698_v59 }
 0x18c   :  { %v799_v13 = vadd.f32 %v1364_v56, %v775_v47  ;;  %v676_v43 = vpop.f32.mrf.mxu0  ;;  %v752_v28 = vpop.f32.mrf.mxu1 }
 0x18d   :  { %v753_v23 = vadd.f32 %v752_v28, %v676_v43 }
 0x18e   :  { %815 = vst.msk [vmem:[%s1460_s4 + $0x68] sm:$0xff] %vm50_vm0, %v799_v13 }
 0x18f   :  { %v790_v38 = vadd.f32 %v1364_v56, %v753_v23 }
 0x191   :  { %806 = vst.msk [vmem:[%s1460_s4 + $0x20] sm:$0xff] %vm50_vm0, %v790_v38 }
 0x194   :  { %v678_v36 = vpop.f32.mrf.mxu0  ;;  %v754_v31 = vpop.f32.mrf.mxu1 }
 0x195   :  { %v755_v27 = vadd.f32 %v754_v31, %v678_v36 }
 0x197   :  { %v791_v35 = vadd.f32 %v1364_v56, %v755_v27 }
 0x199   :  { %807 = vst.msk [vmem:[%s1460_s4 + $0x28] sm:$0xff] %vm50_vm0, %v791_v35 }
 0x1a9   :  { %v701_v29 = vpop.f32.mrf.mxu2  ;;  %v777_v7 = vpop.f32.mrf.mxu3 }
 0x1aa   :  { %v778_v49 = vadd.f32 %v777_v7, %v701_v29 }
 0x1ac   :  { %v800_v57 = vadd.f32 %v1364_v56, %v778_v49 }
 0x1ae   :  { %816 = vst.msk [vmem:[%s1460_s4 + $0x70] sm:$0xff] %vm50_vm0, %v800_v57 }
 0x1b1   :  { %v703_v10 = vpop.f32.mrf.mxu2  ;;  %v779_v21 = vpop.f32.mrf.mxu3 }
 0x1b2   :  { %v780_v37 = vadd.f32 %v779_v21, %v703_v10 }
 0x1b4   :  { %v801_v42 = vadd.f32 %v1364_v56, %v780_v37 }
 0x1b6   :  { %817 = vst.msk [vmem:[%s1460_s4 + $0x78] sm:$0xff] %vm50_vm0, %v801_v42 }
 0x1bb   :  { %v681_v3 = vpop.f32.mrf.mxu0  ;;  %v757_v0 = vpop.f32.mrf.mxu1 }
 0x1bc   :  { %v758_v19 = vadd.f32 %v757_v0, %v681_v3 }
 0x1be   :  { %v792_v50 = vadd.f32 %v1364_v56, %v758_v19 }
 0x1c0   :  { %808 = vst.msk [vmem:[%s1460_s4 + $0x30] sm:$0xff] %vm50_vm0, %v792_v50 }
 0x1c3   :  { %v683_v33 = vpop.f32.mrf.mxu0  ;;  %v759_v22 = vpop.f32.mrf.mxu1 }
 0x1c4   :  { %v760_v4 = vadd.f32 %v759_v22, %v683_v33 }
 0x1c6   :  { %v793_v26 = vadd.f32 %v1364_v56, %v760_v4 }
 0x1c8   :  { %809 = vst.msk [vmem:[%s1460_s4 + $0x38] sm:$0xff] %vm50_vm0, %v793_v26 }

</bundles_post_ra>
